<compile_context>
chip_gen: v6e
topology: v6e:2x2x1
jax: 0.10.0
libtpu: 0.0.40
codegen_flags: <defaults>
</compile_context>

<pallas_src>
import numpy as np

import jax
import jax.numpy as jnp
from jax import lax
from jax.experimental import pallas as pl
from jax.experimental.pallas import tpu as pltpu


# ----------------------------- kernels --------------------------------------

def _havgpool_kernel_folded(x_ref, p_ref, o_ref):
    # x_ref: (tm, K) lane-dense input rows.
    # p_ref: (P, K)  lane-dense pooling matrix with 1/(count*W) folded in.
    # o_ref: (tm, P) output tile.
    o_ref[...] = lax.dot_general(
        x_ref[...], p_ref[...],
        dimension_numbers=(((1,), (1,)), ((), ())),   # contract both last dims
        preferred_element_type=jnp.float32,
    ).astype(o_ref.dtype)


def _havgpool_kernel_scaled(x_ref, p_ref, s_ref, o_ref):
    # Low-precision path: 0/1 indicator (exact in any float dtype) on the MXU,
    # exact f32 scale applied on the tiny (tm, P) result.
    acc = lax.dot_general(
        x_ref[...], p_ref[...],
        dimension_numbers=(((1,), (1,)), ((), ())),
        preferred_element_type=jnp.float32,
    )
    o_ref[...] = (acc * s_ref[...]).astype(o_ref.dtype)


# ----------------------------- host-side helpers ----------------------------

def _round_up(x: int, m: int) -> int:
    return ((x + m - 1) // m) * m


def _adaptive_pool_tables(h, w, part, dtype, fold_scale, groups):
    """Lane-dense pooling matrix (G*part, G*H*W) and f32 scale (1, G*part).

    P[i, h_idx*W + w_idx] = 1 (or 1/(count_i*W) if fold_scale) iff h_idx is in
    adaptive bin i; bin boundaries follow PyTorch's floor/ceil rule.  For
    groups > 1 the matrix is block-diagonal so one fused row pools G channels.
    """
    ind = np.zeros((part, h), dtype=np.float64)
    counts = np.zeros((part,), dtype=np.float64)
    for i in range(part):
        start = (i * h) // part
        end = -(-((i + 1) * h) // part)          # ceil((i+1)*h/part)
        ind[i, start:end] = 1.0
        counts[i] = end - start
    p = np.repeat(ind, w, axis=1)                # (part, H*W); col = h_idx*W + w_idx
    scale = 1.0 / (counts * w)                   # (part,)
    if fold_scale:
        p = p * scale[:, None]
        scale = np.ones_like(scale)
    if groups > 1:
        p = np.kron(np.eye(groups), p)           # block-diagonal (G*part, G*H*W)
        scale = np.tile(scale, groups)
    return (jnp.asarray(p, dtype=dtype),
            jnp.asarray(scale.reshape(1, -1), dtype=jnp.float32))


def _tpu_vmem_and_cores():
    """Best-effort (vmem_capacity_bytes, num_tensorcores) with safe fallbacks."""
    vmem_cap, n_cores = None, 1
    try:
        info = pltpu.get_tpu_info()
        cap = getattr(info, "vmem_capacity_bytes", None)
        if isinstance(cap, (int, np.integer)) and cap > 0:
            vmem_cap = int(cap)
        for name in ("num_cores", "core_count", "tensorcores_per_chip",
                     "num_tensorcores"):
            v = getattr(info, name, None)
            if isinstance(v, (int, np.integer)) and v > 0:
                n_cores = int(v)
                break
    except Exception:
        pass
    if vmem_cap is None:
        vmem_cap = 64 * 1024 * 1024              # conservative (v7x floor)
    return vmem_cap, n_cores


def _invariant_blockspec_kwargs():
    """Single-buffer grid-invariant operands when pipeline_mode is supported."""
    try:
        kw = dict(pipeline_mode=pl.Buffered(1))
        pl.BlockSpec((8, 128), lambda i: (0, 0), **kw)
        return kw
    except Exception:
        return {}


_INVARIANT_KW = _invariant_blockspec_kwargs()


# ----------------------------- public wrapper --------------------------------

def horizontal_avg_pool2d(x: jax.Array, part: int = 8) -> jax.Array:
    """Equivalent of nn.AdaptiveAvgPool2d((part, 1)) on NCHW input."""
    n, c, h, w = x.shape
    nc, hw = n * c, h * w
    itemsize = jnp.dtype(x.dtype).itemsize
    sub = max(8, 32 // itemsize)                 # 8 f32, 16 bf16, 32 int8/fp8
    fold_scale = (x.dtype == jnp.float32)

    # ---- Lane density: fuse G channels per row when the spatial dim is narrow.
    x2d = x.reshape(nc, hw)
    if hw < 128:
        g = min(128, max(-(-128 // hw), -(-128 // part)))
        pad = (-nc) % g
        if pad:
            x2d = jnp.pad(x2d, ((0, pad), (0, 0)))
        rows = (nc + pad) // g
        x2d = x2d.reshape(rows, g * hw)          # contiguous view of G channels/row
    else:
        g, pad, rows = 1, 0, nc
    k = g * hw                                   # contraction length (lane-dense)
    out_cols = g * part                          # output lanes (dense when fused)

    p_mat, scale = _adaptive_pool_tables(h, w, part, x.dtype, fold_scale, g)

    # ---- Generation-aware VMEM budgeting ------------------------------------
    vmem_cap, n_cores = _tpu_vmem_and_cores()
    if vmem_cap >= 100 * 1024 * 1024:            # v5e / v6e: 128 MiB physical VMEM
        per_buffer_budget = 24 * 1024 * 1024
        vmem_limit = 64 * 1024 * 1024
    else:                                        # v7x: 64 MiB physical VMEM
        per_buffer_budget = 14 * 1024 * 1024
        vmem_limit = 44 * 1024 * 1024

    # ---- Row-tile sizing: byte-budget only, dtype-native sublane multiple ----
    row_bytes = _round_up(k, 128) * itemsize     # lane-padded VMEM row size
    tm = max(sub, (per_buffer_budget // max(row_bytes, 1)) // sub * sub)
    tm = min(tm, _round_up(rows, sub))           # don't overshoot small inputs
    # Balanced multi-step split only on chips with >1 TensorCore (megacore).
    if n_cores >= 2 and rows > sub and pl.cdiv(rows, tm) < n_cores:
        tm = max(sub, _round_up(pl.cdiv(rows, n_cores), sub))

    # Make sure the requested scoped VMEM covers the working set.
    p_bytes = _round_up(out_cols, sub) * _round_up(k, 128) * itemsize
    out_bytes = tm * _round_up(out_cols, 128) * itemsize
    est = 2 * tm * row_bytes + 2 * p_bytes + 2 * out_bytes + (2 << 20)
    vmem_limit = int(min(max(vmem_limit, est), vmem_cap))

    grid = (pl.cdiv(rows, tm),)

    in_specs = [
        pl.BlockSpec((tm, k), lambda i: (i, 0)),
        pl.BlockSpec((out_cols, k), lambda i: (0, 0), **_INVARIANT_KW),
    ]
    operands = [x2d, p_mat]
    if fold_scale:
        kernel = _havgpool_kernel_folded
    else:
        kernel = _havgpool_kernel_scaled
        in_specs.append(pl.BlockSpec((1, out_cols), lambda i: (0, 0),
                                     **_INVARIANT_KW))
        operands.append(scale)

    out = pl.pallas_call(
        kernel,
        out_shape=jax.ShapeDtypeStruct((rows, out_cols), x.dtype),
        grid_spec=pltpu.PrefetchScalarGridSpec(
            num_scalar_prefetch=0,
            grid=grid,
            in_specs=in_specs,
            out_specs=pl.BlockSpec((tm, out_cols), lambda i: (i, 0)),
        ),
        compiler_params=pltpu.CompilerParams(
            dimension_semantics=("parallel",),
            vmem_limit_bytes=vmem_limit,
        ),
    )(*operands)

    if g > 1:
        out = out.reshape(rows * g, part)[:nc]   # drop padded channels
    return out.reshape(n, c, part, 1)


# ----------------------------- self-test -------------------------------------

def _reference_adaptive_avg_pool(x, part):
    n, c, h, w = x.shape
    cols = []
    for i in range(part):
        start = (i * h) // part
        end = -(-((i + 1) * h) // part)
        cols.append(jnp.mean(x[:, :, start:end, :], axis=(2, 3)))
    return jnp.stack(cols, axis=-1)[..., None]


if __name__ == "__main__":
    key0, key1 = jax.random.split(jax.random.PRNGKey(0))

    # 1) Main check: f32, H*W >= 128 (non-fused path, scale folded into matrix).
    x = jax.random.normal(key0, (2, 4, 16, 16), dtype=jnp.float32)
    out = jax.block_until_ready(horizontal_avg_pool2d(x, part=8))
    ref = jnp.mean(x.reshape(2, 4, 8, 2, 16), axis=(3, 4))[..., None]
    assert out.shape == (2, 4, 8, 1)
    assert jnp.allclose(out, ref, atol=1e-4, rtol=1e-4)

    # 2) Fused-channels path: f32, H*W < 128 (lane-dense grouped rows/output).
    x_small = jax.random.normal(key1, (2, 4, 7, 7), dtype=jnp.float32)
    out_small = jax.block_until_ready(horizontal_avg_pool2d(x_small, part=8))
    ref_small = _reference_adaptive_avg_pool(x_small, 8)
    assert out_small.shape == (2, 4, 8, 1)
    assert jnp.allclose(out_small, ref_small, atol=1e-4, rtol=1e-4)

    # 3) Low-precision path: bf16 indicator matmul + separate f32 scale.
    x_bf16 = x.astype(jnp.bfloat16)
    out_bf16 = jax.block_until_ready(horizontal_avg_pool2d(x_bf16, part=8))
    ref_bf16 = _reference_adaptive_avg_pool(x_bf16.astype(jnp.float32), 8)
    assert out_bf16.shape == (2, 4, 8, 1)
    assert jnp.allclose(out_bf16.astype(jnp.float32), ref_bf16,
                        atol=1e-2, rtol=1e-2)

    print("KERNEL_OK")
</pallas_src>

<mosaic_0001>
module attributes {stable_mosaic.version = 11 : i64} {
  func.func @_havgpool_kernel_folded(%arg0: i32, %arg1: memref<8x256xf32, #tpu.memory_space<vmem>>, %arg2: memref<8x256xf32, #tpu.memory_space<vmem>>, %arg3: memref<8x8xf32, #tpu.memory_space<vmem>>) attributes {dimension_semantics = [#tpu.dimension_semantics<parallel>], iteration_bounds = array<i64: 1>, scalar_prefetch = 0 : i64, scratch_operands = 0 : i64, tpu.core_type = #tpu.core_type<tc>, window_params = [{transform_indices = @transform_0, window_bounds = array<i64: 8, 256>}, {pipeline_mode = #tpu.pipeline_mode<synchronous>, transform_indices = @transform_1, window_bounds = array<i64: 8, 256>}, {transform_indices = @transform_2, window_bounds = array<i64: 8, 8>}]} {
    %c0 = arith.constant 0 : index
    %c0_0 = arith.constant 0 : index
    %0 = vector.load %arg1[%c0, %c0_0] : memref<8x256xf32, #tpu.memory_space<vmem>>, vector<8x256xf32>
    %c0_1 = arith.constant 0 : index
    %c0_2 = arith.constant 0 : index
    %1 = vector.load %arg2[%c0_1, %c0_2] : memref<8x256xf32, #tpu.memory_space<vmem>>, vector<8x256xf32>
    %cst = arith.constant dense<0.000000e+00> : vector<8x8xf32>
    %2 = tpu.matmul %0, %1, %cst {dimension_numbers = #tpu.dot_dimension_numbers<[1], [1], [0], [0], [0, 0, 1, 0], [], []>} : vector<8x256xf32>, vector<8x256xf32>, vector<8x8xf32> -> vector<8x8xf32>
    %c0_3 = arith.constant 0 : index
    %c0_4 = arith.constant 0 : index
    %3 = vector.load %arg3[%c0_3, %c0_4] : memref<8x8xf32, #tpu.memory_space<vmem>>, vector<8x8xf32>
    tpu.vector_store %arg3[%c0_3, %c0_4], %2 {strides = array<i32>} : memref<8x8xf32, #tpu.memory_space<vmem>>, vector<8x8xf32>,
    return
  }
  func.func @transform_0(%arg0: i32) -> (i32, i32) {
    %c0_i32 = arith.constant 0 : i32
    %c0_i32_0 = arith.constant 0 : i32
    return %arg0, %c0_i32 : i32, i32
  }
  func.func @transform_1(%arg0: i32) -> (i32, i32) {
    %c0_i32 = arith.constant 0 : i32
    %c0_i32_0 = arith.constant 0 : i32
    %c0_i32_1 = arith.constant 0 : i32
    return %c0_i32, %c0_i32_0 : i32, i32
  }
  func.func @transform_2(%arg0: i32) -> (i32, i32) {
    %c0_i32 = arith.constant 0 : i32
    %c0_i32_0 = arith.constant 0 : i32
    return %arg0, %c0_i32 : i32, i32
  }
}

</mosaic_0001>

<bundles_post_ra>
// kernel: tpu_custom_call.1
= control target key start
LH: loop header
LB: loop body
LE: loop exit
PB: predicated region body
PF: predicated region fallthrough
CT: control target
= control target key end

     0   :  { %7 = vsyncpa [#allocation3], 0  ;;  %s224_s0 = inlined_call_operand.hbm [shape: f32[8,256], index: 0, kind: input, shape index: {}]   ;;  %s225_s1 = inlined_call_operand.hbm [shape: f32[8,256], index: 1, kind: input, shape index: {}]   ;;  %s226_s2 = inlined_call_operand.hbm [shape: f32[8,8], index: 2, kind: output, shape index: {}]  }
   0x1   :  { %8 = vsyncpa [#allocation6], 0 }
   0x2   :  { %9 = vsyncpa [#allocation4], 0  ;;  %s197_s9 = smov [#allocation2]   ;;  %s198_s11 = smov [#allocation5]  }
   0x3   :  { %s16_s10 = sshll.u32 %s197_s9, 4  ;;  %s26_s12 = sshll.u32 %s198_s11, 4  ;;  %s17_s10 = int_to_ptr.vmem [resolvable:$true] %s16_s10  ;;  %s27_s12 = int_to_ptr.vmem [resolvable:$true] %s26_s12 }
   0x4   :  { %s139_s13 = scalar_lea.vmem %s17_s10, 256  ;;  %p144_p1 = scmp.lt.s32.totalorder %s17_s10, %s17_s10 }
   0x5   :  { %p140_p0 = scmp.ne.s32.totalorder %s17_s10, %s139_s13  ;;  %p145_p2 = scmp.lt.s32.totalorder %s139_s13, %s139_s13 }
   0x7   :  { %p146_p3 = por %p145_p2, %p144_p1 }
   0x9   :  { %p147_p4 = pnand %p146_p3, %p140_p0 }
   0xb   :  { %150 = shalt.err (!%p147_p4)
}
   0xc   :  { %19 = dma.hbm_to_vmem [thread:$0]  %s224_s0, 256, %s17_s10, [#allocation3]  }
   0xd   :  { %s159_s16 = scalar_lea.vmem %s27_s12, 256  ;;  %p164_p6 = scmp.lt.s32.totalorder %s27_s12, %s27_s12 }
   0xe   :  { %p160_p5 = scmp.ne.s32.totalorder %s27_s12, %s159_s16  ;;  %p165_p7 = scmp.lt.s32.totalorder %s159_s16, %s159_s16 }
  0x10   :  { %p166_p8 = por %p165_p7, %p164_p6 }
  0x12   :  { %p167_p9 = pnand %p166_p8, %p160_p5 }
  0x14   :  { %170 = shalt.err (!%p167_p9)
}
  0x15   :  { %29 = dma.hbm_to_vmem [thread:$0]  %s225_s1, 256, %s27_s12, [#allocation6]  }
  0x16   :  { %191 = dma.done.wait [#allocation3], 256  }
  0x17   :  { %192 = vsyncadd [#allocation3], 4294967040 }
  0x18   :  { %193 = dma.done.wait [#allocation6], 256  }
  0x19   :  { %194 = vsyncadd [#allocation6], 4294967040  ;;  %v39_v0 = vld [vmem:[#allocation5 + $0x8] sm:$0xff]  ;;  %v38_v1 = vld [vmem:[#allocation5] sm:$0xff]  ;;  %s199_s0 = smov [#allocation7]   ;;  %vm110_vm0 = vcmask 64512  }
  0x1a   :  { %v37_v2 = vld [vmem:[#allocation2 + $0x8] sm:$0xff]  ;;  %70 = vmatprep.subr.mxu0 %v39_v0  ;;  %v36_v3 = vld [vmem:[#allocation2] sm:$0xff]  ;;  %s118_s19 = sshll.u32 %s199_s0, 4  ;;  %s119_s19 = int_to_ptr.vmem [resolvable:$true] %s118_s19 }
  0x1b   :  { %104 = vmatprep.mubr.f32.mxu0 %v37_v2  ;;  %71 = vmatpush1.xpose.msra.mxu0 %v38_v1  ;;  %s171_s1 = scalar_lea.vmem %s119_s19, 128  ;;  %p176_p11 = scmp.lt.s32.totalorder %s119_s19, %s119_s19 }
  0x1c   :  { %p172_p10 = scmp.ne.s32.totalorder %s119_s19, %s171_s1  ;;  %p177_p12 = scmp.lt.s32.totalorder %s171_s1, %s171_s1 }
  0x1e   :  { %105 = vmatmul.mubr.f32.vlgmr.msra.gmra.mxu0 %v36_v3  ;;  %p178_p13 = por %p177_p12, %p176_p11 }
  0x20   :  { %p179_p0 = pnand %p178_p13, %p172_p10 }
  0xde   :  { %v106_v4 = vpop.f32.mrf.mxu0 }
  0xdf   :  { %111 = vst.msk [vmem:[#allocation7] sm:$0xff] %vm110_vm0, %v106_v4 }
  0xe0   :  { %v108_v5 = vpop.f32.mrf.mxu0 }
  0xe1   :  { %182 = shalt.err (!%p179_p0)
}
  0xe2   :  { %121 = dma.vmem_to_hbm [thread:$0]  %s119_s19, 128, %s226_s2, [#allocation4]  }
  0xe3   :  { %195 = dma.done.wait [#allocation4], 128  }
  0xe4   :  { %196 = vsyncadd [#allocation4], 4294967168 }
  0xe5   :  { %125 = vsyncpa [#allocation3], 1 }
  0xe6   :  { %126 = vsyncpa [#allocation6], 1 }
  0xe7   :  { %127 = vsyncpa [#allocation4], 1 }

</bundles_post_ra>
